<compile_context>
chip_gen: v7x
topology: tpu7x:2x2x1
jax: 0.10.0
libtpu: 0.0.40
codegen_flags: <defaults>
</compile_context>

<pallas_src>
import jax
import jax.numpy as jnp
from jax.experimental import pallas as pl
from jax.experimental.pallas import tpu as pltpu


def _round_up(n, m):
    return ((n + m - 1) // m) * m


# -----------------------------------------------------------------------------
# Kernels
# -----------------------------------------------------------------------------
def _fused_linear_kernel(x_ref, w_ref, b_ref, o_ref):
    """o = x @ W + b, where W/b are the two Linear layers folded together."""
    y = jnp.dot(x_ref[...], w_ref[...], preferred_element_type=jnp.float32)
    o_ref[...] = (y + b_ref[...]).astype(o_ref.dtype)


def _two_layer_kernel(x_ref, w1_ref, b1_ref, w2_ref, b2_ref, o_ref):
    """o = (x @ W1^T + b1) @ W2^T + b2, f32 accumulation on the MXU."""
    h = jnp.dot(x_ref[...], w1_ref[...], preferred_element_type=jnp.float32)
    h = h + b1_ref[...]                       # bias broadcast over batch rows
    y = jnp.dot(h.astype(w2_ref.dtype), w2_ref[...],
                preferred_element_type=jnp.float32)
    o_ref[...] = (y + b2_ref[...]).astype(o_ref.dtype)


# -----------------------------------------------------------------------------
# VMEM budgeting (generation aware)
# -----------------------------------------------------------------------------
def _vmem_budget_and_limit():
    default_cap = 64 * 1024 * 1024
    try:
        cap = int(getattr(pltpu.get_tpu_info(), "vmem_capacity_bytes",
                          default_cap))
    except Exception:  # interpret mode / older runtimes
        cap = default_cap
    # ~half of physical per-TC VMEM: 64 MiB on v5e/v6e, 32 MiB on v7x.
    budget = cap // 2
    limit = min(cap - (8 << 20), budget + (16 << 20))
    limit = max(limit, 16 << 20)
    return budget, int(limit)


# -----------------------------------------------------------------------------
# One-time parameter preparation (fold + cast) — keep the result and reuse it.
# -----------------------------------------------------------------------------
def prepare_mlp_encoder_params(w1_t, b1, w2_t, b2, *, fuse=True,
                               compute_dtype=None):
    """w1_t: [in, hidden], b1: [hidden], w2_t: [hidden, out], b2: [out]."""
    compute_dtype = jnp.dtype(w1_t.dtype if compute_dtype is None
                              else compute_dtype)
    b1r = jnp.reshape(b1, (1, -1)).astype(jnp.float32)
    b2r = jnp.reshape(b2, (1, -1)).astype(jnp.float32)
    if fuse:
        # No nonlinearity between layers -> fold once here, never per call:
        #   x @ (W1^T @ W2^T) + (b1 @ W2^T + b2)
        w1f = w1_t.astype(jnp.float32)
        w2f = w2_t.astype(jnp.float32)
        w = jnp.dot(w1f, w2f, preferred_element_type=jnp.float32)
        b = jnp.dot(b1r, w2f, preferred_element_type=jnp.float32) + b2r
        return {"fuse": True, "compute_dtype": compute_dtype,
                "w": w.astype(compute_dtype), "b": b}
    return {"fuse": False, "compute_dtype": compute_dtype,
            "w1": w1_t.astype(compute_dtype), "b1": b1r,
            "w2": w2_t.astype(compute_dtype), "b2": b2r}


# -----------------------------------------------------------------------------
# Forward
# -----------------------------------------------------------------------------
def mlp_encoder_forward(params, x, *, bm_cap=1024, core_parallel=False):
    """Forward pass: x [B, in_dim] -> [B, out_dim] in x.dtype."""
    B, in_dim = x.shape
    fuse = params["fuse"]
    compute_dtype = params["compute_dtype"]
    out_dtype = x.dtype

    if fuse:
        assert params["w"].shape[0] == in_dim
        out_dim = params["w"].shape[1]
    else:
        assert params["w1"].shape[0] == in_dim
        hidden = params["w1"].shape[1]
        out_dim = params["w2"].shape[1]

    sub = 16 if compute_dtype == jnp.dtype(jnp.bfloat16) else 8
    budget, vmem_limit = _vmem_budget_and_limit()

    xsize = compute_dtype.itemsize
    wsize = compute_dtype.itemsize
    osize = jnp.dtype(out_dtype).itemsize

    if fuse:
        fixed = 2 * (in_dim * out_dim * wsize + out_dim * 4)
        per_row = 2 * (in_dim * xsize + out_dim * osize) + out_dim * 4  # + acc
    else:
        fixed = 2 * ((in_dim * hidden + hidden * out_dim) * wsize
                     + (hidden + out_dim) * 4)
        per_row = (2 * (in_dim * xsize + out_dim * osize)
                   + (hidden + out_dim) * 4)                    # + h, + acc

    # Whole batch in one block when it fits: no batch pad, no output slice.
    if B <= bm_cap and fixed + B * per_row <= budget:
        bm, B_p = B, B
    else:
        bm = min(bm_cap, _round_up(B, sub))
        bm = max(sub, (bm // sub) * sub)
        while bm > sub and fixed + bm * per_row > budget:
            bm = max(sub, (bm // 2 // sub) * sub)
        B_p = _round_up(B, bm)

    grid = (B_p // bm,)

    xp = x.astype(compute_dtype)
    if B_p != B:
        xp = jnp.pad(xp, ((0, B_p - B), (0, 0)))

    batch_sem = pltpu.CORE_PARALLEL if core_parallel else "parallel"
    compiler_params = pltpu.CompilerParams(
        dimension_semantics=(batch_sem,),
        vmem_limit_bytes=vmem_limit,
    )

    if fuse:
        out = pl.pallas_call(
            _fused_linear_kernel,
            out_shape=jax.ShapeDtypeStruct((B_p, out_dim), out_dtype),
            grid_spec=pltpu.PrefetchScalarGridSpec(
                num_scalar_prefetch=0,
                grid=grid,
                in_specs=[
                    pl.BlockSpec((bm, in_dim), lambda i: (i, 0)),       # x tile
                    pl.BlockSpec((in_dim, out_dim), lambda i: (0, 0)),  # folded W
                    pl.BlockSpec((1, out_dim), lambda i: (0, 0)),       # folded b
                ],
                out_specs=pl.BlockSpec((bm, out_dim), lambda i: (i, 0)),
            ),
            compiler_params=compiler_params,
        )(xp, params["w"], params["b"])
    else:
        out = pl.pallas_call(
            _two_layer_kernel,
            out_shape=jax.ShapeDtypeStruct((B_p, out_dim), out_dtype),
            grid_spec=pltpu.PrefetchScalarGridSpec(
                num_scalar_prefetch=0,
                grid=grid,
                in_specs=[
                    pl.BlockSpec((bm, in_dim), lambda i: (i, 0)),       # x tile
                    pl.BlockSpec((in_dim, hidden), lambda i: (0, 0)),   # W1^T
                    pl.BlockSpec((1, hidden), lambda i: (0, 0)),        # b1
                    pl.BlockSpec((hidden, out_dim), lambda i: (0, 0)),  # W2^T
                    pl.BlockSpec((1, out_dim), lambda i: (0, 0)),       # b2
                ],
                out_specs=pl.BlockSpec((bm, out_dim), lambda i: (i, 0)),
            ),
            compiler_params=compiler_params,
        )(xp, params["w1"], params["b1"], params["w2"], params["b2"])

    return out if B_p == B else out[:B]


def _init_linear(key, fan_in, fan_out):
    """Deterministic init mimicking nn.Linear default (+/- 1/sqrt(fan_in))."""
    k_w, k_b = jax.random.split(key)
    bound = 1.0 / jnp.sqrt(jnp.float32(fan_in))
    # PyTorch stores W as [out, in]; we keep the transposed [in, out] form.
    w_t = jax.random.uniform(k_w, (fan_in, fan_out), jnp.float32,
                             -bound, bound)
    b = jax.random.uniform(k_b, (fan_out,), jnp.float32, -bound, bound)
    return w_t, b


if __name__ == "__main__":
    # MLPEncoder(in_dim=32, out_dim=8, hidden_dim=16); batch deliberately not a
    # multiple of 8.
    B, in_dim, hidden_dim, out_dim = 10, 32, 16, 8

    key = jax.random.PRNGKey(0)
    k_x, k_l1, k_l2 = jax.random.split(key, 3)

    x = jax.random.normal(k_x, (B, in_dim), dtype=jnp.float32)
    w1_t, b1 = _init_linear(k_l1, in_dim, hidden_dim)
    w2_t, b2 = _init_linear(k_l2, hidden_dim, out_dim)

    # Plain-JAX reference (same math as torch: Linear -> Linear).
    ref = (x @ w1_t + b1) @ w2_t + b2

    # 1) Faithful two-matmul kernel, f32.
    p_two = prepare_mlp_encoder_params(w1_t, b1, w2_t, b2, fuse=False)
    out_two = jax.block_until_ready(mlp_encoder_forward(p_two, x))
    assert out_two.shape == (B, out_dim)
    assert jnp.allclose(out_two, ref, atol=1e-4, rtol=1e-4)

    # 2) Fused single-matmul kernel (default production path, f32).  Math is
    #    identical up to f32 re-association of the two layers.
    p_fused = prepare_mlp_encoder_params(w1_t, b1, w2_t, b2, fuse=True)
    out_fused = jax.block_until_ready(mlp_encoder_forward(p_fused, x))
    assert out_fused.shape == (B, out_dim)
    assert jnp.allclose(out_fused, ref, atol=1e-3, rtol=1e-3)

    # 3) Multi-step grid + batch-pad path (tiny bm_cap just to exercise it).
    x_big = jax.random.normal(k_x, (37, in_dim), dtype=jnp.float32)
    ref_big = (x_big @ w1_t + b1) @ w2_t + b2
    out_big = jax.block_until_ready(
        mlp_encoder_forward(p_fused, x_big, bm_cap=16))
    assert out_big.shape == (37, out_dim)
    assert jnp.allclose(out_big, ref_big, atol=1e-3, rtol=1e-3)

    # 4) bf16 compute path with f32 accumulation (v6e/v7x fast path).  The
    #    folded W1@W2 product is quantized to bf16 once at prepare time, so the
    #    error is larger than the unfused f32 path (documented, loose tol).
    p_bf16 = prepare_mlp_encoder_params(w1_t, b1, w2_t, b2, fuse=True,
                                        compute_dtype=jnp.bfloat16)
    out_bf16 = jax.block_until_ready(mlp_encoder_forward(p_bf16, x))
    assert out_bf16.shape == (B, out_dim)
    assert jnp.allclose(out_bf16, ref, atol=5e-2, rtol=5e-2)

    print("KERNEL_OK")
</pallas_src>

<mosaic_0001>
module attributes {stable_mosaic.version = 11 : i64} {
  func.func @_two_layer_kernel(%arg0: i32, %arg1: memref<10x32xf32, #tpu.memory_space<vmem>>, %arg2: memref<32x16xf32, #tpu.memory_space<vmem>>, %arg3: memref<1x16xf32, #tpu.memory_space<vmem>>, %arg4: memref<16x8xf32, #tpu.memory_space<vmem>>, %arg5: memref<1x8xf32, #tpu.memory_space<vmem>>, %arg6: memref<10x8xf32, #tpu.memory_space<vmem>>) attributes {dimension_semantics = [#tpu.dimension_semantics<parallel>], iteration_bounds = array<i64: 1>, scalar_prefetch = 0 : i64, scratch_operands = 0 : i64, tpu.core_type = #tpu.core_type<tc>, window_params = [{transform_indices = @transform_0, window_bounds = array<i64: 10, 32>}, {pipeline_mode = #tpu.pipeline_mode<synchronous>, transform_indices = @transform_1, window_bounds = array<i64: 32, 16>}, {pipeline_mode = #tpu.pipeline_mode<synchronous>, transform_indices = @transform_2, window_bounds = array<i64: 1, 16>}, {pipeline_mode = #tpu.pipeline_mode<synchronous>, transform_indices = @transform_3, window_bounds = array<i64: 16, 8>}, {pipeline_mode = #tpu.pipeline_mode<synchronous>, transform_indices = @transform_4, window_bounds = array<i64: 1, 8>}, {transform_indices = @transform_5, window_bounds = array<i64: 10, 8>}]} {
    %c0 = arith.constant 0 : index
    %c0_0 = arith.constant 0 : index
    %0 = vector.load %arg1[%c0, %c0_0] : memref<10x32xf32, #tpu.memory_space<vmem>>, vector<10x32xf32>
    %c0_1 = arith.constant 0 : index
    %c0_2 = arith.constant 0 : index
    %1 = vector.load %arg2[%c0_1, %c0_2] : memref<32x16xf32, #tpu.memory_space<vmem>>, vector<32x16xf32>
    %cst = arith.constant dense<0.000000e+00> : vector<10x16xf32>
    %2 = tpu.matmul %0, %1, %cst {dimension_numbers = #tpu.dot_dimension_numbers<[1], [0], [0], [1], [0, 0, 1, 1], [], []>} : vector<10x32xf32>, vector<32x16xf32>, vector<10x16xf32> -> vector<10x16xf32>
    %c0_3 = arith.constant 0 : index
    %c0_4 = arith.constant 0 : index
    %3 = vector.load %arg3[%c0_3, %c0_4] : memref<1x16xf32, #tpu.memory_space<vmem>>, vector<1x16xf32>
    %4 = vector.broadcast %3 : vector<1x16xf32> to vector<10x16xf32>
    %5 = arith.addf %2, %4 : vector<10x16xf32>
    %c0_5 = arith.constant 0 : index
    %c0_6 = arith.constant 0 : index
    %6 = vector.load %arg4[%c0_5, %c0_6] : memref<16x8xf32, #tpu.memory_space<vmem>>, vector<16x8xf32>
    %cst_7 = arith.constant dense<0.000000e+00> : vector<10x8xf32>
    %7 = tpu.matmul %5, %6, %cst_7 {dimension_numbers = #tpu.dot_dimension_numbers<[1], [0], [0], [1], [0, 0, 1, 1], [], []>} : vector<10x16xf32>, vector<16x8xf32>, vector<10x8xf32> -> vector<10x8xf32>
    %c0_8 = arith.constant 0 : index
    %c0_9 = arith.constant 0 : index
    %8 = vector.load %arg5[%c0_8, %c0_9] : memref<1x8xf32, #tpu.memory_space<vmem>>, vector<1x8xf32>
    %9 = vector.broadcast %8 : vector<1x8xf32> to vector<10x8xf32>
    %10 = arith.addf %7, %9 : vector<10x8xf32>
    %c0_10 = arith.constant 0 : index
    %c0_11 = arith.constant 0 : index
    %11 = vector.load %arg6[%c0_10, %c0_11] : memref<10x8xf32, #tpu.memory_space<vmem>>, vector<10x8xf32>
    tpu.vector_store %arg6[%c0_10, %c0_11], %10 {strides = array<i32>} : memref<10x8xf32, #tpu.memory_space<vmem>>, vector<10x8xf32>,
    return
  }
  func.func @transform_0(%arg0: i32) -> (i32, i32) {
    %c0_i32 = arith.constant 0 : i32
    %c0_i32_0 = arith.constant 0 : i32
    return %arg0, %c0_i32 : i32, i32
  }
  func.func @transform_1(%arg0: i32) -> (i32, i32) {
    %c0_i32 = arith.constant 0 : i32
    %c0_i32_0 = arith.constant 0 : i32
    %c0_i32_1 = arith.constant 0 : i32
    return %c0_i32, %c0_i32_0 : i32, i32
  }
  func.func @transform_2(%arg0: i32) -> (i32, i32) {
    %c0_i32 = arith.constant 0 : i32
    %c0_i32_0 = arith.constant 0 : i32
    %c0_i32_1 = arith.constant 0 : i32
    return %c0_i32, %c0_i32_0 : i32, i32
  }
  func.func @transform_3(%arg0: i32) -> (i32, i32) {
    %c0_i32 = arith.constant 0 : i32
    %c0_i32_0 = arith.constant 0 : i32
    %c0_i32_1 = arith.constant 0 : i32
    return %c0_i32, %c0_i32_0 : i32, i32
  }
  func.func @transform_4(%arg0: i32) -> (i32, i32) {
    %c0_i32 = arith.constant 0 : i32
    %c0_i32_0 = arith.constant 0 : i32
    %c0_i32_1 = arith.constant 0 : i32
    return %c0_i32, %c0_i32_0 : i32, i32
  }
  func.func @transform_5(%arg0: i32) -> (i32, i32) {
    %c0_i32 = arith.constant 0 : i32
    %c0_i32_0 = arith.constant 0 : i32
    return %arg0, %c0_i32 : i32, i32
  }
}

</mosaic_0001>

<bundles_post_ra>
// kernel: tpu_custom_call.1
= control target key start
LH: loop header
LB: loop body
LE: loop exit
PB: predicated region body
PF: predicated region fallthrough
CT: control target
= control target key end

     0   :  { %vm33_vm0 = vcmask 261120   ;;  %vm124_vm1 = vcmask 130048   ;;  %vm208_vm2 = vcmask 58368   ;;  %vm206_vm3 = vcmask 64512   ;;  %s326_s1 = inlined_call_operand.vmem [shape: f32[32,16], index: 1, kind: input, shape index: {}]   ;;  %s327_s0 = inlined_call_operand.vmem [shape: f32[10,32], index: 0, kind: input, shape index: {}]   ;;  %s328_s3 = inlined_call_operand.vmem [shape: f32[16,8], index: 3, kind: input, shape index: {}]   ;;  %s329_s2 = inlined_call_operand.vmem [shape: f32[1,16], index: 2, kind: input, shape index: {}]   ;;  %s330_s4 = inlined_call_operand.vmem [shape: f32[1,8], index: 4, kind: input, shape index: {}]   ;;  %s331_s5 = inlined_call_operand.vmem [shape: f32[10,8], index: 5, kind: output, shape index: {}]  }
   0x1   :  { %v22_v0 = vld [vmem:[%s326_s1] sm:$0xff]  ;;  %v23_v1 = vld [vmem:[%s326_s1 + $0x8] sm:$0xff]  ;;  %v24_v2 = vld [vmem:[%s326_s1 + $0x10] sm:$0xff] }
   0x2   :  { %v248_v3 = vpack.c.bf16 %v23_v1, %v22_v0  ;;  %v25_v4 = vld [vmem:[%s326_s1 + $0x18] sm:$0xff]  ;;  %v20_v5 = vld [vmem:[%s327_s0] sm:$0xff]  ;;  %v21_v7 = vld [vmem:[%s327_s0 + $0x8] sm:$0x3] }
   0x3   :  { %v252_v6 = vpack.c.bf16 %v25_v4, %v24_v2  ;;  %238 = vmatprep.mubr.msk.f32.mxu0 %vm33_vm0, %v20_v5  ;;  %v115_v8 = vld [vmem:[%s328_s3] sm:$0xff]  ;;  %v116_v9 = vld [vmem:[%s328_s3 + $0x8] sm:$0xff] }
   0x4   :  { %249 = vmatprep.subr.bf16.mxu0 %v248_v3  ;;  %v256_v10 = vpack.c.bf16 %v116_v9, %v115_v8  ;;  %v214_v11 = vld [vmem:[%s329_s2] ss:$0 sm:$0xff] }
   0x5   :  { %251 = vmatpush3.bf16.msra.mxu0 %v248_v3  ;;  %v217_v16 = vld [vmem:[%s330_s4] ss:$0 sm:$0xff] }
   0x6   :  { %253 = vmatprep.subr.bf16.mxu0 %v252_v6  ;;  %257 = vmatprep.subr.bf16.mxu1 %v256_v10 }
   0x7   :  { %259 = vmatpush3.bf16.msra.mxu1 %v256_v10 }
   0x9   :  { %255 = vmatpush3.bf16.msra.mxu0 %v252_v6 }
   0xc   :  { %239 = vmatmul.mubr.msk.f32.vlgmr.msra.gmra.mrb[0].mxu0 %vm33_vm0, %v21_v7 }
  0xdf   :  { %v240_v12 = vpop.f32.mrb[0].mxu0 }
  0xe0   :  { %v106_v13 = vpop.f32.mrb[1].mxu0  ;;  %v112_v15 = vadd.f32 %v240_v12, %v214_v11 }
  0xe1   :  { %v107_v14 = vadd.f32 %v214_v11, %v106_v13 }
  0xe3   :  { %245 = vmatprep.mubr.msk.f32.mxu1 %vm124_vm1, %v107_v14 }
  0xe4   :  { %246 = vmatmul.mubr.msk.f32.vlgmr.msra.gmra.mrb[0].mxu1 %vm124_vm1, %v112_v15 }
 0x1b7   :  { %v247_v17 = vpop.f32.mrb[0].mxu1 }
 0x1b8   :  { %v203_v18 = vadd.f32 %v247_v17, %v217_v16  ;;  %v197_v19 = vpop.f32.mrb[1].mxu1 }
 0x1b9   :  { %v198_v20 = vadd.f32 %v217_v16, %v197_v19 }
 0x1ba   :  { %209 = vst.msk [vmem:[%s331_s5 + $0x8] sm:$0x3] %vm208_vm2, %v203_v18 }
 0x1bb   :  { %207 = vst.msk [vmem:[%s331_s5] sm:$0xff] %vm206_vm3, %v198_v20 }

</bundles_post_ra>
